<compile_context>
chip_gen: v6e
topology: v6e:2x2x1
jax: 0.10.0
libtpu: 0.0.40
codegen_flags: <defaults>
</compile_context>

<pallas_src>
import functools

import jax
import jax.numpy as jnp
from jax.experimental import pallas as pl
from jax.experimental.pallas import tpu as pltpu

PATCH_SIZE = 16  # unused by the forward pass (kept for fidelity with opt.patch_size)


def _cdiv(a, b):
    return -(-a // b)


def _pick_vmem_limit_bytes():
    """Generation-aware scoped-VMEM limit (~half of physical, clamped)."""
    cap = 128 * 1024 * 1024
    try:
        cap = int(getattr(pltpu.get_tpu_info(), "vmem_capacity_bytes", cap))
    except Exception:
        pass
    # v5e/v6e (128 MiB physical) -> 64 MiB limit; v7x (64 MiB) -> 32 MiB limit.
    return max(16 * 1024 * 1024, min(cap // 2, 64 * 1024 * 1024))


def _auto_batch_tile(bp, h, wk, in_itemsize, vmem_limit):
    """Largest batch tile whose double-buffered input + stencil temporaries fit
    well under vmem_limit (budget = 45% of the limit -> ~2x safety margin)."""
    plane_f32 = h * wk * 4
    # 2x double-buffered input tile (HBM dtype) + ~12 live f32 full-tile
    # temporaries (x, 8 rolled copies, diffs) if Mosaic does not fully fuse.
    per_image = 2 * h * wk * in_itemsize + 12 * plane_f32
    fixed = 6 * plane_f32  # acc + 3 weight planes + double-buffered output slab
    budget = int(0.45 * vmem_limit) - fixed
    tb = budget // per_image if budget > 0 else 1
    # Beyond ~8 MiB of f32 compute tile the 0.35 us/step overhead is already
    # well amortized; no benefit to going bigger.
    tb = min(tb, max(1, (8 * 1024 * 1024) // plane_f32))
    return max(1, min(tb, bp))


def _laplacian_loss_kernel(x_ref, o_ref, acc_ref, w1_ref, w2_ref, w34_ref, *,
                           inv_n1, inv_n2, inv_n34, w_img,
                           steps_per_core, packed_batch, mask_batch):
    """Processes one (batch_tile, H, Wk) tile of the fused 4-stencil loss."""
    c = pl.program_id(0)          # "parallel" axis (TensorCore split on v7x)
    b = pl.program_id(1)          # "arbitrary" axis (reduction over batch tiles)
    tb, h, wk = x_ref.shape

    # ---- init: zero the vector accumulator and build the loop-invariant
    # weight planes (edge mask * 1/count for each of the four means) once,
    # instead of re-deriving iota/compare/select work every grid step.
    @pl.when(b == 0)
    def _init():
        acc_ref[...] = jnp.zeros_like(acc_ref)
        col = jax.lax.broadcasted_iota(jnp.int32, (h, wk), 1)
        row = jax.lax.broadcasted_iota(jnp.int32, (h, wk), 0)
        # With lane packing each packed row holds wk // w_img sub-images; the
        # column-validity test is per sub-image (w_img is a power of two there).
        colm = (col & (w_img - 1)) if w_img != wk else col
        col_in = (colm >= 1) & (colm <= w_img - 2)
        row_in = (row >= 1) & (row <= h - 2)
        zero = jnp.float32(0.0)
        w1_ref[...] = jnp.where(col_in, jnp.float32(inv_n1), zero)
        w2_ref[...] = jnp.where(row_in, jnp.float32(inv_n2), zero)
        w34_ref[...] = jnp.where(col_in & row_in, jnp.float32(inv_n34), zero)

    # Cast per tile: bf16 inputs stay narrow on the HBM/DMA side.
    # TODO(synk): optionally keep the stencil math in bf16 on v6e/v7x (2x VPU
    # throughput) once validated against the f32 reference; v5e has no bf16 VPU.
    x = x_ref[...].astype(jnp.float32)            # (tb, h, wk)

    # Neighbor shifts via XLU lane/sublane rotations; wrap-around positions get
    # zero weight.  Each stencil is symmetric in its rolled pair, so the roll
    # direction convention cannot change the result.
    x_l = pltpu.roll(x, shift=1, axis=2)          # x[.., i, j-1]
    x_r = pltpu.roll(x, shift=wk - 1, axis=2)     # x[.., i, j+1]
    x_u = pltpu.roll(x, shift=1, axis=1)          # x[.., i-1, j]
    x_d = pltpu.roll(x, shift=h - 1, axis=1)      # x[.., i+1, j]
    x_ul = pltpu.roll(x_u, shift=1, axis=2)       # x[.., i-1, j-1]
    x_dr = pltpu.roll(x_d, shift=wk - 1, axis=2)  # x[.., i+1, j+1]
    x_dl = pltpu.roll(x_d, shift=1, axis=2)       # x[.., i+1, j-1]
    x_ur = pltpu.roll(x_u, shift=wk - 1, axis=2)  # x[.., i-1, j+1]

    two_x = 2.0 * x
    # Fused, pre-weighted contribution of every element (weights fold the edge
    # masks and the per-term 1/count).  Assumes finite inputs: 0-weight * Inf
    # would give NaN, the usual caveat of any masked-multiply formulation.
    t = (jnp.abs(x_l + x_r - two_x) * w1_ref[...]
         + jnp.abs(x_u + x_d - two_x) * w2_ref[...]
         + (jnp.abs(x_ul + x_dr - two_x)
            + jnp.abs(x_dl + x_ur - two_x)) * w34_ref[...])

    # Reduce over the leading (batch) axis only: pure VALU adds into the (h,wk)
    # vector accumulator; the cross-lane reduction is deferred to the wrapper.
    if mask_batch:
        # Tail / overhang tiles: drop rows whose global packed-batch index is
        # past the end.  One scalar splat + per-row vector compare/select (a
        # select, not a multiply, so NaN garbage in padded DMA rows cannot leak).
        base = (c * steps_per_core + b) * tb
        nvalid = jnp.full((h, wk), packed_batch - base, jnp.int32)
        part = jnp.zeros((h, wk), jnp.float32)
        for i in range(tb):
            part = part + jnp.where(nvalid > i, t[i], jnp.float32(0.0))
        acc_ref[...] += part
    else:
        acc_ref[...] += jnp.sum(t, axis=0)

    # ---- finalize: write this core's lane-dense partial plane (still missing
    # the final /4); the tiny cross-lane / cross-core sum runs in XLA.
    @pl.when(b == pl.num_programs(1) - 1)
    def _finalize():
        o_ref[0] = acc_ref[...]


def laplacian_loss(x, *, batch_tile=None, num_cores=2):
    """x: [B, H, W] float array (f32 or bf16). Returns scalar f32 loss.

    num_cores: size of the leading "parallel" grid axis (2 engages both
    TensorCores on v7x; harmless serial loop on single-TC v5e/v6e).
    """
    B, H, W = x.shape
    assert H >= 3 and W >= 3, "Laplacian stencils need H >= 3 and W >= 3"

    # Per-term mean denominators use the ORIGINAL (unpacked/unpadded) B, H, W.
    inv_n1 = 1.0 / float(B * H * (W - 2))
    inv_n2 = 1.0 / float(B * (H - 2) * W)
    inv_n34 = 1.0 / float(B * (H - 2) * (W - 2))

    # --- Lane packing for small W (e.g. patch_size=16 patches) -----------------
    # If W is a small power-of-two divisor of 128, pack k = 128 // W images side
    # by side along the lane axis so every VALU/XLU op and DMA is lane-dense.
    # Zero-padded images contribute exactly 0 to the weighted sums.
    k = 128 // W if (W < 128 and 128 % W == 0) else 1
    if k > 1:
        pad = (-B) % k
        if pad:
            x = jnp.pad(x, ((0, pad), (0, 0), (0, 0)))
        bp = (B + pad) // k
        wk = k * W
        x = jnp.transpose(x.reshape(bp, k, H, W), (0, 2, 1, 3)).reshape(bp, H, wk)
    else:
        bp, wk = B, W

    vmem_limit = _pick_vmem_limit_bytes()
    in_itemsize = jnp.dtype(x.dtype).itemsize

    if batch_tile is None:
        tb_max = _auto_batch_tile(bp, H, wk, in_itemsize, vmem_limit)
        blocks = _cdiv(bp, tb_max)
        nc = max(1, min(num_cores, blocks))
        steps = _cdiv(blocks, nc)
        # Rebalance so nc*steps*batch_tile overshoots bp as little as possible
        # (usually exactly 0 -> no tail masking at all).
        batch_tile = _cdiv(bp, nc * steps)
    else:
        batch_tile = max(1, min(int(batch_tile), bp))
        blocks = _cdiv(bp, batch_tile)
        nc = max(1, min(num_cores, blocks))
        steps = _cdiv(blocks, nc)

    n_blocks = _cdiv(bp, batch_tile)
    mask_batch = (nc * steps * batch_tile) != bp

    kernel = functools.partial(
        _laplacian_loss_kernel,
        inv_n1=inv_n1, inv_n2=inv_n2, inv_n34=inv_n34,
        w_img=W, steps_per_core=steps, packed_batch=bp, mask_batch=mask_batch)

    def x_index_map(c, b):
        # Clamp so overhang steps re-read the last valid block (fully masked).
        return (jnp.minimum(c * steps + b, n_blocks - 1), 0, 0)

    # NOTE: on v5e only (lowest HBM BW), a pipeline_mode=pl.Buffered(3) sweep on
    # the input BlockSpec is worth trying if profiles show exposed DMA; on
    # compute-bound v6e/v7x it just burns VMEM.  For very large single images,
    # tile H in slabs with a 1-row halo instead of tiling the batch.
    out = pl.pallas_call(
        kernel,
        out_shape=jax.ShapeDtypeStruct((nc, H, wk), jnp.float32),
        grid_spec=pltpu.PrefetchScalarGridSpec(
            num_scalar_prefetch=0,
            grid=(nc, steps),
            in_specs=[pl.BlockSpec((batch_tile, H, wk), x_index_map)],
            out_specs=pl.BlockSpec((1, H, wk), lambda c, b: (c, 0, 0)),
            scratch_shapes=[pltpu.VMEM((H, wk), jnp.float32) for _ in range(4)],
        ),
        compiler_params=pltpu.CompilerParams(
            dimension_semantics=("parallel", "arbitrary"),
            vmem_limit_bytes=vmem_limit,
        ),
    )(x)
    # Tiny cross-core / cross-lane reduction and the final /4 in XLA land.
    return jnp.sum(out) * 0.25


def laplacian_loss_ref(x):
    """Pure-JAX reference mirroring the PyTorch forward exactly."""
    x = x.astype(jnp.float32)
    loss = lambda v: jnp.mean(jnp.abs(v))
    L1 = loss(x[:, :, :-2] + x[:, :, 2:] - 2 * x[:, :, 1:-1])
    L2 = loss(x[:, :-2, :] + x[:, 2:, :] - 2 * x[:, 1:-1, :])
    L3 = loss(x[:, :-2, :-2] + x[:, 2:, 2:] - 2 * x[:, 1:-1, 1:-1])
    L4 = loss(x[:, 2:, :-2] + x[:, :-2, 2:] - 2 * x[:, 1:-1, 1:-1])
    return (L1 + L2 + L3 + L4) / 4


if __name__ == "__main__":
    key = jax.random.PRNGKey(0)
    cases = [
        # (B, H, W, dtype, batch_tile) — all small, each exercising a code path:
        (2, 16, 128, jnp.float32, 1),     # even 2-way "parallel" core split, no masking
        (5, 16, 16, jnp.float32, None),   # lane packing (k=8) + zero-padded batch, auto tile
        (7, 16, 128, jnp.bfloat16, 2),    # bf16 input, cdiv tail -> masked partial block
        (3, 24, 128, jnp.float32, 1),     # overhang block on the parallel axis (clamp + mask)
    ]
    for idx, (B, H, W, dtype, bt) in enumerate(cases):
        key, sub = jax.random.split(key)
        xi = jax.random.normal(sub, (B, H, W), dtype=jnp.float32).astype(dtype)
        got = jax.block_until_ready(laplacian_loss(xi, batch_tile=bt))
        ref = jax.block_until_ready(laplacian_loss_ref(xi))
        assert jnp.allclose(got, ref, rtol=2e-5, atol=1e-6), (idx, got, ref)

    print("KERNEL_OK")
</pallas_src>

<mosaic_0001>
module attributes {stable_mosaic.version = 11 : i64} {
  func.func @_laplacian_loss_kernel(%arg0: i32, %arg1: i32, %arg2: memref<1x16x128xf32, #tpu.memory_space<vmem>>, %arg3: memref<1x16x128xf32, #tpu.memory_space<vmem>>, %arg4: memref<16x128xf32, #tpu.memory_space<vmem>>, %arg5: memref<16x128xf32, #tpu.memory_space<vmem>>, %arg6: memref<16x128xf32, #tpu.memory_space<vmem>>, %arg7: memref<16x128xf32, #tpu.memory_space<vmem>>) attributes {dimension_semantics = [#tpu.dimension_semantics<parallel>, #tpu.dimension_semantics<arbitrary>], iteration_bounds = array<i64: 2, 1>, scalar_prefetch = 0 : i64, scratch_operands = 4 : i64, tpu.core_type = #tpu.core_type<tc>, window_params = [{transform_indices = @transform_0, window_bounds = array<i64: 1, 16, 128>}, {transform_indices = @transform_1, window_bounds = array<i64: 1, 16, 128>}]} {
    %c0_i32 = arith.constant 0 : i32
    %0 = arith.cmpi eq, %arg1, %c0_i32 : i32
    %1 = arith.extui %0 : i1 to i32
    %c0_i32_0 = arith.constant 0 : i32
    %2 = arith.cmpi ne, %1, %c0_i32_0 : i32
    scf.if %2 {
      %cst_21 = arith.constant 0.000000e+00 : f32
      %45 = vector.broadcast %cst_21 : f32 to vector<16x128xf32>
      %c0_22 = arith.constant 0 : index
      %c0_23 = arith.constant 0 : index
      %46 = vector.load %arg4[%c0_22, %c0_23] : memref<16x128xf32, #tpu.memory_space<vmem>>, vector<16x128xf32>
      tpu.vector_store %arg4[%c0_22, %c0_23], %45 {strides = array<i32>} : memref<16x128xf32, #tpu.memory_space<vmem>>, vector<16x128xf32>,
      %47 = tpu.iota {dimensions = array<i32: 1>} : vector<16x128xi32>
      %48 = tpu.iota {dimensions = array<i32: 0>} : vector<16x128xi32>
      %c1_i32_24 = arith.constant 1 : i32
      %49 = vector.broadcast %c1_i32_24 : i32 to vector<16x128xi32>
      %50 = arith.cmpi sge, %47, %49 : vector<16x128xi32>
      %c126_i32 = arith.constant 126 : i32
      %51 = vector.broadcast %c126_i32 : i32 to vector<16x128xi32>
      %52 = arith.cmpi sle, %47, %51 : vector<16x128xi32>
      %53 = arith.andi %50, %52 : vector<16x128xi1>
      %c1_i32_25 = arith.constant 1 : i32
      %54 = vector.broadcast %c1_i32_25 : i32 to vector<16x128xi32>
      %55 = arith.cmpi sge, %48, %54 : vector<16x128xi32>
      %c14_i32 = arith.constant 14 : i32
      %56 = vector.broadcast %c14_i32 : i32 to vector<16x128xi32>
      %57 = arith.cmpi sle, %48, %56 : vector<16x128xi32>
      %58 = arith.andi %55, %57 : vector<16x128xi1>
      %cst_26 = arith.constant 2.48015887E-4 : f32
      %cst_27 = arith.constant 0.000000e+00 : f32
      %59 = vector.broadcast %cst_26 : f32 to vector<16x128xf32>
      %60 = vector.broadcast %cst_27 : f32 to vector<16x128xf32>
      %61 = arith.select %53, %59, %60 : vector<16x128xi1>, vector<16x128xf32>
      %c0_28 = arith.constant 0 : index
      %c0_29 = arith.constant 0 : index
      %62 = vector.load %arg5[%c0_28, %c0_29] : memref<16x128xf32, #tpu.memory_space<vmem>>, vector<16x128xf32>
      tpu.vector_store %arg5[%c0_28, %c0_29], %61 {strides = array<i32>} : memref<16x128xf32, #tpu.memory_space<vmem>>, vector<16x128xf32>,
      %cst_30 = arith.constant 2.7901787E-4 : f32
      %cst_31 = arith.constant 0.000000e+00 : f32
      %63 = vector.broadcast %cst_30 : f32 to vector<16x128xf32>
      %64 = vector.broadcast %cst_31 : f32 to vector<16x128xf32>
      %65 = arith.select %58, %63, %64 : vector<16x128xi1>, vector<16x128xf32>
      %c0_32 = arith.constant 0 : index
      %c0_33 = arith.constant 0 : index
      %66 = vector.load %arg6[%c0_32, %c0_33] : memref<16x128xf32, #tpu.memory_space<vmem>>, vector<16x128xf32>
      tpu.vector_store %arg6[%c0_32, %c0_33], %65 {strides = array<i32>} : memref<16x128xf32, #tpu.memory_space<vmem>>, vector<16x128xf32>,
      %67 = arith.andi %53, %58 : vector<16x128xi1>
      %cst_34 = arith.constant 2.83446716E-4 : f32
      %cst_35 = arith.constant 0.000000e+00 : f32
      %68 = vector.broadcast %cst_34 : f32 to vector<16x128xf32>
      %69 = vector.broadcast %cst_35 : f32 to vector<16x128xf32>
      %70 = arith.select %67, %68, %69 : vector<16x128xi1>, vector<16x128xf32>
      %c0_36 = arith.constant 0 : index
      %c0_37 = arith.constant 0 : index
      %71 = vector.load %arg7[%c0_36, %c0_37] : memref<16x128xf32, #tpu.memory_space<vmem>>, vector<16x128xf32>
      tpu.vector_store %arg7[%c0_36, %c0_37], %70 {strides = array<i32>} : memref<16x128xf32, #tpu.memory_space<vmem>>, vector<16x128xf32>,
    } else {
    }
    %c0 = arith.constant 0 : index
    %c0_1 = arith.constant 0 : index
    %c0_2 = arith.constant 0 : index
    %3 = vector.load %arg2[%c0, %c0_1, %c0_2] : memref<1x16x128xf32, #tpu.memory_space<vmem>>, vector<1x16x128xf32>
    %c1_i32 = arith.constant 1 : i32
    %4 = tpu.dynamic_rotate %3 by %c1_i32 dim 2 : vector<1x16x128xf32>, i32 -> vector<1x16x128xf32>
    %c127_i32 = arith.constant 127 : i32
    %5 = tpu.dynamic_rotate %3 by %c127_i32 dim 2 : vector<1x16x128xf32>, i32 -> vector<1x16x128xf32>
    %c1_i32_3 = arith.constant 1 : i32
    %6 = tpu.dynamic_rotate %3 by %c1_i32_3 dim 1 : vector<1x16x128xf32>, i32 -> vector<1x16x128xf32>
    %c15_i32 = arith.constant 15 : i32
    %7 = tpu.dynamic_rotate %3 by %c15_i32 dim 1 : vector<1x16x128xf32>, i32 -> vector<1x16x128xf32>
    %c1_i32_4 = arith.constant 1 : i32
    %8 = tpu.dynamic_rotate %6 by %c1_i32_4 dim 2 : vector<1x16x128xf32>, i32 -> vector<1x16x128xf32>
    %c127_i32_5 = arith.constant 127 : i32
    %9 = tpu.dynamic_rotate %7 by %c127_i32_5 dim 2 : vector<1x16x128xf32>, i32 -> vector<1x16x128xf32>
    %c1_i32_6 = arith.constant 1 : i32
    %10 = tpu.dynamic_rotate %7 by %c1_i32_6 dim 2 : vector<1x16x128xf32>, i32 -> vector<1x16x128xf32>
    %c127_i32_7 = arith.constant 127 : i32
    %11 = tpu.dynamic_rotate %6 by %c127_i32_7 dim 2 : vector<1x16x128xf32>, i32 -> vector<1x16x128xf32>
    %cst = arith.constant 2.000000e+00 : f32
    %12 = vector.broadcast %cst : f32 to vector<1x16x128xf32>
    %13 = arith.mulf %12, %3 : vector<1x16x128xf32>
    %14 = arith.addf %4, %5 : vector<1x16x128xf32>
    %15 = arith.subf %14, %13 : vector<1x16x128xf32>
    %16 = math.absf %15 : vector<1x16x128xf32>
    %c0_8 = arith.constant 0 : index
    %c0_9 = arith.constant 0 : index
    %17 = vector.load %arg5[%c0_8, %c0_9] : memref<16x128xf32, #tpu.memory_space<vmem>>, vector<16x128xf32>
    %18 = vector.shape_cast %17 : vector<16x128xf32> to vector<1x16x128xf32>
    %19 = arith.mulf %16, %18 : vector<1x16x128xf32>
    %20 = arith.addf %6, %7 : vector<1x16x128xf32>
    %21 = arith.subf %20, %13 : vector<1x16x128xf32>
    %22 = math.absf %21 : vector<1x16x128xf32>
    %c0_10 = arith.constant 0 : index
    %c0_11 = arith.constant 0 : index
    %23 = vector.load %arg6[%c0_10, %c0_11] : memref<16x128xf32, #tpu.memory_space<vmem>>, vector<16x128xf32>
    %24 = vector.shape_cast %23 : vector<16x128xf32> to vector<1x16x128xf32>
    %25 = arith.mulf %22, %24 : vector<1x16x128xf32>
    %26 = arith.addf %19, %25 : vector<1x16x128xf32>
    %27 = arith.addf %8, %9 : vector<1x16x128xf32>
    %28 = arith.subf %27, %13 : vector<1x16x128xf32>
    %29 = math.absf %28 : vector<1x16x128xf32>
    %30 = arith.addf %10, %11 : vector<1x16x128xf32>
    %31 = arith.subf %30, %13 : vector<1x16x128xf32>
    %32 = math.absf %31 : vector<1x16x128xf32>
    %33 = arith.addf %29, %32 : vector<1x16x128xf32>
    %c0_12 = arith.constant 0 : index
    %c0_13 = arith.constant 0 : index
    %34 = vector.load %arg7[%c0_12, %c0_13] : memref<16x128xf32, #tpu.memory_space<vmem>>, vector<16x128xf32>
    %35 = vector.shape_cast %34 : vector<16x128xf32> to vector<1x16x128xf32>
    %36 = arith.mulf %33, %35 : vector<1x16x128xf32>
    %37 = arith.addf %26, %36 : vector<1x16x128xf32>
    %c0_14 = arith.constant 0 : index
    %c0_15 = arith.constant 0 : index
    %38 = vector.load %arg4[%c0_14, %c0_15] : memref<16x128xf32, #tpu.memory_space<vmem>>, vector<16x128xf32>
    %cst_16 = arith.constant dense<0.000000e+00> : vector<16x128xf32>
    %39 = vector.multi_reduction <add>, %37, %cst_16 [0] : vector<1x16x128xf32> to vector<16x128xf32>
    %40 = arith.addf %38, %39 : vector<16x128xf32>
    %c0_17 = arith.constant 0 : index
    %c0_18 = arith.constant 0 : index
    %41 = vector.load %arg4[%c0_17, %c0_18] : memref<16x128xf32, #tpu.memory_space<vmem>>, vector<16x128xf32>
    tpu.vector_store %arg4[%c0_17, %c0_18], %40 {strides = array<i32>} : memref<16x128xf32, #tpu.memory_space<vmem>>, vector<16x128xf32>,
    %c0_i32_19 = arith.constant 0 : i32
    %42 = arith.cmpi eq, %arg1, %c0_i32_19 : i32
    %43 = arith.extui %42 : i1 to i32
    %c0_i32_20 = arith.constant 0 : i32
    %44 = arith.cmpi ne, %43, %c0_i32_20 : i32
    scf.if %44 {
      %c0_21 = arith.constant 0 : index
      %c0_22 = arith.constant 0 : index
      %45 = vector.load %arg4[%c0_21, %c0_22] : memref<16x128xf32, #tpu.memory_space<vmem>>, vector<16x128xf32>
      %c0_23 = arith.constant 0 : index
      %c0_24 = arith.constant 0 : index
      %c0_25 = arith.constant 0 : index
      %46 = vector.load %arg3[%c0_23, %c0_24, %c0_25] : memref<1x16x128xf32, #tpu.memory_space<vmem>>, vector<1x16x128xf32>
      %47 = vector.shape_cast %46 : vector<1x16x128xf32> to vector<16x128xf32>
      %48 = vector.shape_cast %45 : vector<16x128xf32> to vector<1x16x128xf32>
      tpu.vector_store %arg3[%c0_23, %c0_24, %c0_25], %48 {strides = array<i32>} : memref<1x16x128xf32, #tpu.memory_space<vmem>>, vector<1x16x128xf32>,
    } else {
    }
    return
  }
  func.func @transform_0(%arg0: i32, %arg1: i32) -> (i32, i32, i32) {
    %c1_i32 = arith.constant 1 : i32
    %0 = arith.muli %arg0, %c1_i32 : i32
    %1 = arith.addi %0, %arg1 : i32
    %c1_i32_0 = arith.constant 1 : i32
    %2 = arith.minsi %1, %c1_i32_0 : i32
    %c0_i32 = arith.constant 0 : i32
    %c0_i32_1 = arith.constant 0 : i32
    %c0_i32_2 = arith.constant 0 : i32
    return %2, %c0_i32, %c0_i32_1 : i32, i32, i32
  }
  func.func @transform_1(%arg0: i32, %arg1: i32) -> (i32, i32, i32) {
    %c0_i32 = arith.constant 0 : i32
    %c0_i32_0 = arith.constant 0 : i32
    %c0_i32_1 = arith.constant 0 : i32
    return %arg0, %c0_i32, %c0_i32_0 : i32, i32, i32
  }
}

</mosaic_0001>

<bundles_post_ra>
// kernel: tpu_custom_call.1
= control target key start
LH: loop header
LB: loop body
LE: loop exit
PB: predicated region body
PF: predicated region fallthrough
CT: control target
= control target key end

     0   :  { %6 = vsyncpa [#allocation7], 0  ;;  %s875_s0 = inlined_call_operand.hbm [shape: f32[2,16,128], index: 0, kind: input, shape index: {}]   ;;  %s876_s1 = inlined_call_operand.hbm [shape: f32[2,16,128], index: 1, kind: output, shape index: {}]  }
   0x1   :  { %8 = vsyncpa [#allocation7 + $0x1], 0 }
   0x2   :  { %9 = vsyncpa [#allocation8], 0 }
   0x3   :  { %11 = vsyncpa [#allocation8 + $0x1], 0  ;;  %s647_s6 = smov 0   ;;  %s649_s7 = smov 0  }
   0x4   :  { %s651_s8 = smov 0   ;;  %s653_s9 = smov 0  }
   0x5   :  { %s655_s10 = smov 0   ;;  %s657_s11 = smov 0  }
   0x6   :  { %s659_s12 = smov 0   ;;  %s661_s13 = smov 0  }
   0x7   :  { %s663_s14 = smov 0  }
   0x8 LB: > { %s384_s15 = sadd.s32 4294967295, %s626_s14   ;;  %s385_s16 = sadd.s32 4294967294, %s626_s14   ;;  %s626_s14 = sphi %s663_s14, %s17_s14   ;;  %s622_s13 = sphi %s661_s13, %s896_s13   ;;  %s618_s12 = sphi %s659_s12, %s895_s12   ;;  %s614_s11 = sphi %s657_s11, %s894_s11   ;;  %s610_s10 = sphi %s655_s10, %s893_s10   ;;  %s606_s9 = sphi %s653_s9, %s892_s9   ;;  %s602_s8 = sphi %s651_s8, %s891_s8   ;;  %s598_s7 = sphi %s649_s7, %s890_s7   ;;  %s594_s6 = sphi %s647_s6, %s889_s6  }
   0x9   : > { %s29_s17 = sadd.s32 1, %s622_s13  ;;  %p34_p0 = scmp.lt.s32.totalorder %s622_s13, 1 }
   0xa   : > { %p31_p1 = scmp.ge.s32.totalorder %s29_s17, 2  ;;  %s42_s18 = sadd.s32 1, %s614_s11 }
   0xb   : > { %s696_s19 = scalar_select %p34_p0, %s622_s13, 1 }
   0xc   : > { %s898_s17 = smov (%p31_p1, %s29_s17), 0  ;;  %p49_p2 = scmp.ne.s32.totalorder %s614_s11, %s610_s10 }
   0xd   : > { %p50_p3 = scmp.eq.s32.totalorder %s626_s14, 0  ;;  %p37_p4 = scmp.lt.s32.totalorder %s898_s17, 1 }
   0xe   : > { %p55_p5 = scmp.ne.s32.totalorder %s610_s10, %s606_s9  ;;  %p56_p7 = scmp.eq.s32.totalorder %s384_s15, 0 }
   0xf   : > { %p705_p6 = por %p50_p3, %p49_p2  ;;  %s65_s23 = ssub.s32 %s622_s13, %s898_s17 }
  0x10   : > { %s38_s21 = scalar_select %p37_p4, %s898_s17, 1 }
  0x11   : > { %p710_p8 = por %p56_p7, %p55_p5  ;;  %p66_p9 = scmp.eq.s32.totalorder %s65_s23, 0 }
  0x12   : > { %s39_s24 = ssub.s32 %s696_s19, %s38_s21  ;;  %s68_s25 = sadd.s32 1, %s602_s8 }
  0x13   : > { %p40_p10 = scmp.eq.s32.totalorder %s39_s24, 0  ;;  %p78_p11 = scmp.ne.s32.totalorder %s602_s8, %s598_s7 }
  0x14   : > { %s719_s26 = scalar_select %p66_p9, %s602_s8, %s68_s25  }
  0x15   : > { %s722_s27 = scalar_select %p40_p10, %s614_s11, %s42_s18  }
  0x16   : > { %p79_p12 = scmp.eq.s32.totalorder %s384_s15, 1  ;;  %p84_p13 = scmp.ne.s32.totalorder %s598_s7, %s594_s6 }
  0x17   : > { %p85_p0 = scmp.eq.s32.totalorder %s385_s16, 1  ;;  %p413_p4 = scmp.lt.s32.totalorder %s626_s14, 2 }
  0x18   : > { %p728_p1 = por %p79_p12, %p78_p11  ;;  %s105_s30 = sand.u32 1, %s614_s11  }
  0x19   : > { %p733_p3 = por %p85_p0, %p84_p13  ;;  %s399_s2 = sshll.u32 %s696_s19, 8 }
  0x1a   : > { %s388_s3 = sshll.u32 %s105_s30, 4  ;;  %s118_s9 = scalar_lea.hbm %s875_s0, %s399_s2 }
  0x1b   : > { %s109_s15 = scalar_lea.vmem [#allocation6], %s388_s3  ;;  %p745_p5 = pnand %p413_p4, %p705_p6 }
  0x1c   : > { %s119_s18 = sshll.u32 %s109_s15, 4  ;;  %s106_s21 = scalar_lea.sflag [#allocation7], %s105_s30  ;;  %s120_s18 = int_to_ptr.vmem [resolvable:$true] %s119_s18 }
  0x1d   : > { %p496_p7 = pneg %p745_p5  ;;  %s507_s23 = scalar_lea.vmem %s120_s18, 256 }
  0x1e   : > { %p508_p9 = scmp.ne.s32.totalorder %s120_s18, %s507_s23  ;;  %s628_s19 = smov [#allocation6]  }
  0x1f   : > { %s512_s24 = sshll.u32 %s628_s19, 4  ;;  %s513_s24 = int_to_ptr.vmem [resolvable:$false] %s512_s24 }
  0x20   : > { %p510_p10 = pnand %p508_p9, %p496_p7  ;;  %s514_s25 = scalar_lea.vmem %s513_s24, 512 }
  0x21   : > { %p515_p12 = scmp.lt.s32.totalorder %s120_s18, %s513_s24  ;;  %p516_p13 = scmp.lt.s32.totalorder %s514_s25, %s507_s23 }
  0x22   : > { %p511_p11 = pneg %p510_p10 }
  0x23   : > { %p517_p0 = por %p516_p13, %p515_p12 }
  0x25   : > { %p518_p6 = pnand %p517_p0, %p511_p11 }
  0x27   : > { %521 = shalt.err (!%p518_p6)
}
  0x28   : > { %s629_s20 = smov 128   ;;  %s630_s30 = smov 8  }
  0x29   : > { %408 = dma.hbm_to_vmem [thread:$0]  (!%p745_p5), %s118_s9, 256, %s120_s18, %s106_s21, %s629_s20, %s629_s20, %s630_s30  }
  0x2a   : > { %p391_p4 = scmp.ge.s32.totalorder %s626_s14, 1  ;;  %p127_p2 = scmp.lt.s32.totalorder %s626_s14, 3 }
  0x2c   : > { %p128_p7 = pnand %p391_p4, %p127_p2 }
  0x2d   : > { %s133_s2 = sand.u32 (!%p128_p7), 1, %s610_s10  }
  0x2e   : > { %131 = sbr.rel (%p128_p7) target bundleno = 214 (0xd6), region = 24  ;;  %s392_s3 = sshll.u32 (!%p128_p7), %s133_s2, 4 }
  0x2f   : > { %s134_s4 = scalar_lea.sflag (!%p128_p7), [#allocation7], %s133_s2  ;;  %s137_s5 = scalar_lea.vmem (!%p128_p7), [#allocation6], %s392_s3 }
  0x33   : > { %585 = dma.done.wait (%p710_p8), %s134_s4, 256  }
  0x34   : > { %587 = vsyncadd (%p710_p8), %s134_s4, 4294967040  ;;  %v165_v0 = vlaneseq  ;;  %v192_v3 = vld [vmem:[%s137_s5] sm:$0xff]  ;;  %v193_v4 = vld [vmem:[%s137_s5 + $0x8] sm:$0xff]  ;;  %s631_s9 = smov 127   ;;  %s632_s15 = smov 1   ;;  %v633_v22 = vmov 0.0  }
  0x35   : > { %198 = vrot.lane.b32.xlu1 %v192_v3, %s631_s9  ;;  %194 = vrot.lane.b32.xlu0 %v192_v3, %s632_s15  ;;  %v202_v5 = vrot.slane %v192_v3, 7  ;;  %v203_v6 = vrot.slane %v193_v4, 7  ;;  %v209_v8 = vrot.slane %v192_v3, 1  ;;  %v210_v9 = vrot.slane %v193_v4, 1  ;;  %s153_s22 = sand.u32 1, %s598_s7   ;;  %s400_s16 = sshll.u32 %s618_s12, 8 }
  0x36   : > { %v168_v1 = vshrl.u32 %v165_v0, 7  ;;  %v166_v2 = vand.u32 127, %v165_v0  ;;  %v762_v10 = vmul.f32 2.0, %v192_v3  ;;  %v764_v11 = vmul.f32 2.0, %v193_v4  ;;  %s393_s18 = sshll.u32 %s153_s22, 4  ;;  %s816_s25 = scalar_lea.hbm %s876_s1, %s400_s16 }
  0x37   : > { %s155_s21 = scalar_lea.vmem [#allocation9], %s393_s18  ;;  %s820_s20 = scalar_lea.sflag [#allocation8], %s153_s22 }
  0x38   : > { %vm206_vm0 = vcmp.lt.s32.totalorder %v168_v1, 1  ;;  %vm170_vm1 = vcmp.ge.s32.totalorder %v166_v2, 1  ;;  %vm171_vm2 = vcmp.le.s32.totalorder %v166_v2, 126  ;;  %vm211_vm3 = vcmp.lt.s32.totalorder %v168_v1, 7  ;;  %s303_s23 = sshll.u32 %s155_s21, 4  ;;  %s634_s30 = smov [#allocation9]   ;;  %s818_s23 = int_to_ptr.vmem [resolvable:$true] %s303_s23 }
  0x39   : > { %v169_v7 = vadd.s32 8, %v168_v1  ;;  %vm173_vm4 = vcmp.ge.s32.totalorder %v168_v1, 1  ;;  %vm767_vm5 = vmand %vm170_vm1, %vm171_vm2  ;;  %v208_v13 = vsel %vm206_vm0, %v203_v6, %v202_v5  ;;  %v207_v14 = vsel %vm206_vm0, %v202_v5, %v203_v6  ;;  %200 = vrot.lane.b32.xlu1 %v193_v4, %s631_s9  ;;  %196 = vrot.lane.b32.xlu0 %v193_v4, %s632_s15  ;;  %s522_s12 = scalar_lea.vmem %s818_s23, 256  ;;  %s526_s2 = sshll.u32 %s634_s30, 4  ;;  %s527_s2 = int_to_ptr.vmem [resolvable:$false] %s526_s2 }
  0x3a   : > { %v212_v15 = vsel %vm211_vm3, %v209_v8, %v210_v9  ;;  %v213_v16 = vsel %vm211_vm3, %v210_v9, %v209_v8  ;;  %vm775_vm6 = vmand %vm767_vm5, %vm173_vm4  ;;  %v182_v23 = vsel %vm173_vm4, 0.00027901787, %v633_v22  ;;  %v179_v34 = vsel %vm767_vm5, 0.0002480159, %v633_v22  ;;  %p523_p8 = scmp.ne.s32.totalorder %s818_s23, %s522_s12  ;;  %s528_s3 = scalar_lea.vmem %s527_s2, 512 }
  0x3b   : > { %v242_v18 = vadd.f32 %v212_v15, %v208_v13  ;;  %vm176_vm7 = vcmp.le.s32.totalorder %v169_v7, 14  ;;  %v243_v19 = vadd.f32 %v213_v16, %v207_v14  ;;  %v188_v1 = vsel %vm775_vm6, 0.00028344672, %v633_v22  ;;  %p529_p9 = scmp.lt.s32.totalorder %s818_s23, %s527_s2  ;;  %p530_p10 = scmp.lt.s32.totalorder %s528_s3, %s522_s12 }
  0x3c   : > { %v183_v24 = vsel %vm176_vm7, 0.00027901787, %v633_v22  ;;  %vm791_vm8 = vmand %vm767_vm5, %vm176_vm7  ;;  %p524_p2 = pnand %p523_p8, %p728_p1 }
  0x3d   : > { %v244_v20 = vsub.f32 %v242_v18, %v762_v10  ;;  %v245_v21 = vsub.f32 %v243_v19, %v764_v11  ;;  %214 = vrot.lane.b32.xlu0 %v208_v13, %s632_s15  ;;  %216 = vrot.lane.b32.xlu1 %v207_v14, %s632_s15  ;;  %v189_v2 = vsel %vm791_vm8, 0.00028344672, %v633_v22  ;;  %p531_p11 = por %p530_p10, %p529_p9 }
  0x3e   : > { %p525_p5 = pneg %p524_p2 }
  0x3f   : > { %v246_v25 = vand.u32 2147483647, %v244_v20  ;;  %v247_v26 = vand.u32 2147483647, %v245_v21 }
  0x40   : > { %p532_p12 = pnand %p531_p11, %p525_p5 }
  0x41   : > { %v250_v27 = vmul.f32 %v246_v25, %v182_v23  ;;  %v251_v28 = vmul.f32 %v247_v26, %v183_v24  ;;  %218 = vrot.lane.b32.xlu0 %v212_v15, %s631_s9  ;;  %220 = vrot.lane.b32.xlu1 %v213_v16, %s631_s9 }
  0x45   : > { %222 = vrot.lane.b32.xlu0 %v212_v15, %s632_s15  ;;  %224 = vrot.lane.b32.xlu1 %v213_v16, %s632_s15 }
  0x49   : > { %226 = vrot.lane.b32.xlu0 %v208_v13, %s631_s9  ;;  %228 = vrot.lane.b32.xlu1 %v207_v14, %s631_s9 }
  0xa7   : > { %v199_v30 = vpop.permute.xlu1 %198  ;;  %v195_v31 = vpop.permute.xlu0 %194 }
  0xa8   : > { %v232_v32 = vadd.f32 %v199_v30, %v195_v31 }
  0xaa   : > { %v234_v33 = vsub.f32 %v232_v32, %v762_v10 }
  0xab   : > { %v201_v35 = vpop.permute.xlu1 %200  ;;  %v197_v36 = vpop.permute.xlu0 %196 }
  0xac   : > { %v236_v37 = vand.u32 2147483647, %v234_v33  ;;  %v233_v38 = vadd.f32 %v201_v35, %v197_v36 }
  0xae   : > { %v240_v39 = vmul.f32 %v236_v37, %v179_v34  ;;  %v235_v40 = vsub.f32 %v233_v38, %v764_v11 }
  0xaf   : > { %v215_v41 = vpop.permute.xlu0 %214  ;;  %v217_v42 = vpop.permute.xlu1 %216 }
  0xb0   : > { %v252_v43 = vadd.f32 %v250_v27, %v240_v39  ;;  %v237_v44 = vand.u32 2147483647, %v235_v40 }
  0xb2   : > { %v241_v45 = vmul.f32 %v237_v44, %v179_v34 }
  0xb3   : > { %v219_v46 = vpop.permute.xlu0 %218  ;;  %v221_v47 = vpop.permute.xlu1 %220 }
  0xb4   : > { %v253_v48 = vadd.f32 %v251_v28, %v241_v45  ;;  %v254_v49 = vadd.f32 %v219_v46, %v215_v41  ;;  %v255_v52 = vadd.f32 %v221_v47, %v217_v42 }
  0xb6   : > { %v256_v53 = vsub.f32 %v254_v49, %v762_v10  ;;  %v257_v56 = vsub.f32 %v255_v52, %v764_v11 }
  0xb7   : > { %v223_v50 = vpop.permute.xlu0 %222  ;;  %v225_v51 = vpop.permute.xlu1 %224 }
  0xb8   : > { %v258_v61 = vand.u32 2147483647, %v256_v53  ;;  %v259_v62 = vand.u32 2147483647, %v257_v56 }
  0xbb   : > { %v227_v54 = vpop.permute.xlu0 %226  ;;  %v229_v55 = vpop.permute.xlu1 %228 }
  0xbc   : > { %v260_v57 = vadd.f32 %v227_v54, %v223_v50  ;;  %v261_v58 = vadd.f32 %v229_v55, %v225_v51 }
  0xbe   : > { %v262_v59 = vsub.f32 %v260_v57, %v762_v10  ;;  %v263_v60 = vsub.f32 %v261_v58, %v764_v11 }
  0xc0   : > { %v264_v63 = vand.u32 2147483647, %v262_v59  ;;  %v265_v0 = vand.u32 2147483647, %v263_v60 }
  0xc2   : > { %v266_v3 = vadd.f32 %v264_v63, %v258_v61  ;;  %v267_v4 = vadd.f32 %v265_v0, %v259_v62 }
  0xc4   : > { %v270_v5 = vmul.f32 %v266_v3, %v188_v1  ;;  %v271_v6 = vmul.f32 %v267_v4, %v189_v2 }
  0xc6   : > { %v272_v7 = vadd.f32 %v270_v5, %v252_v43  ;;  %v273_v8 = vadd.f32 %v271_v6, %v253_v48 }
  0xc8   : > { %287 = vst [vmem:[%s155_s21] sm:$0xff] %v272_v7  ;;  %288 = vst [vmem:[%s155_s21 + $0x8] sm:$0xff] %v273_v8 }
  0xc9   : > { %535 = shalt.err (!%p532_p12)
}
  0xca   : > { %s536_s4 = scalar_lea.hbm %s816_s25, 256  ;;  %s540_s15 = scalar_lea.hbm %s876_s1, 512 }
  0xcb   : > { %p537_p13 = scmp.ne.s32.totalorder %s816_s25, %s536_s4  ;;  %p541_p4 = scmp.lt.s32.totalorder %s816_s25, %s876_s1 }
  0xcc   : > { %p542_p7 = scmp.lt.s32.totalorder %s540_s15, %s536_s4 }
  0xcd   : > { %p538_p0 = pnand %p537_p13, %p728_p1 }
  0xce   : > { %p543_p8 = por %p542_p7, %p541_p4 }
  0xcf   : > { %p539_p6 = pneg %p538_p0 }
  0xd1   : > { %p544_p2 = pnand %p543_p8, %p539_p6 }
  0xd3   : > { %547 = shalt.err (!%p544_p2)
}
  0xd4   : > { %s635_s16 = smov 128   ;;  %s636_s21 = smov 8  }
  0xd5   : > { %403 = dma.vmem_to_hbm [thread:$0]  (%p728_p1), %s818_s23, 256, %s816_s25, %s820_s20, %s635_s16, %s635_s16, %s636_s21  }
  0xd6 PF: > { %s318_s19 = sand.u32 1, %s594_s6   ;;  %p888_p5 = scmp.ge.s32.totalorder %s626_s14, 2 }
  0xd7   : > { %s319_s24 = scalar_lea.sflag [#allocation8], %s318_s19 }
  0xd8   : > { %p410_p9 = pnand %p888_p5, %p733_p3 }
  0xda   : > { %p411_p10 = pneg %p410_p9 }
  0xdc   : > { %589 = dma.done.wait (%p411_p10), %s319_s24, 256  }
  0xdd   : > { %591 = vsyncadd (%p411_p10), %s319_s24, 4294967040  ;;  %s17_s14 = sadd.s32 1, %s626_s14   ;;  %s889_s6 = smov %s598_s7 }
  0xde   : > { %p14_p11 = scmp.ge.s32.totalorder %s17_s14, 4   ;;  %s890_s7 = smov %s602_s8 }
  0xdf   : > { %s891_s8 = smov %s719_s26  ;;  %s892_s9 = smov %s610_s10 }
  0xe0   : > { %s893_s10 = smov %s614_s11  ;;  %s894_s11 = smov %s722_s27 }
  0xe1   : > { %s895_s12 = smov %s622_s13  ;;  %s896_s13 = smov %s898_s17 }
  0xe2   :  { %16 = sbr.rel (!%p14_p11) target bundleno = 8 (0x8), region = 77 }
  0xe7   :  { %324 = vsyncpa [#allocation7], 1 }
  0xe8   :  { %326 = vsyncpa [#allocation7 + $0x1], 1 }
  0xe9   :  { %327 = vsyncpa [#allocation8], 1 }
  0xea   :  { %329 = vsyncpa [#allocation8 + $0x1], 1 }

</bundles_post_ra>
